<compile_context>
chip_gen: v6e
topology: v6e:2x2x1
jax: 0.10.0
libtpu: 0.0.40
codegen_flags: <defaults>
</compile_context>

<pallas_src>
import jax
import jax.numpy as jnp
from jax import lax
from jax.experimental import pallas as pl
from jax.experimental.pallas import tpu as pltpu


def _round_up(n: int, m: int) -> int:
    return ((n + m - 1) // m) * m


def critic_kernel(xt_ref, wpack_ref, b2_ref, o_ref):
    """One batch tile.

    xt_ref:    (in_dim, TILE_B)   state, transposed (batch on the lane axis)
    wpack_ref: (Hp, in_dim + 2)   packed [w1 | b1 | w2], Hp = round_up(H, 8)
    b2_ref:    (1,)               out-layer bias, scalar in SMEM
    o_ref:     (1, TILE_B)        lane-dense value row
    """
    in_dim = xt_ref.shape[0]
    hp = wpack_ref.shape[0]
    tile_b = xt_ref.shape[1]

    xt = xt_ref[...]                                    # (in_dim, TILE_B)
    # Hoisted once per kernel invocation (JAX does not CSE broadcasts).
    xrows = [xt[k:k + 1, :] for k in range(in_dim)]     # each (1, TILE_B)

    if in_dim > 16:
        # Genuinely deep contraction: use the MXU (unused for pendulum's in_dim=3).
        w1 = wpack_ref[:, :in_dim]
        h = jnp.dot(w1, xt, preferred_element_type=jnp.float32)
        h = jnp.maximum(h + wpack_ref[:, in_dim:in_dim + 1], 0.0)
        v = jnp.sum(h * wpack_ref[:, in_dim + 1:in_dim + 2], axis=0, keepdims=True)
    else:
        # VPU path, chunked over H in sublane-sized groups of 8 so the live
        # working set stays at a few (8, TILE_B) slabs instead of (H, TILE_B).
        n_chunk = hp // 8

        def body(c, acc):
            base = pl.multiple_of(c * 8, 8)
            wc = wpack_ref[pl.ds(base, 8), :]           # (8, in_dim + 2)
            # Layer 1 as in_dim broadcast FMAs (outer products) on the VPU.
            h = wc[:, 0:1] * xrows[0]                   # (8,1)*(1,T) -> (8,T)
            for k in range(1, in_dim):
                h = h + wc[:, k:k + 1] * xrows[k]
            h = jnp.maximum(h + wc[:, in_dim:in_dim + 1], 0.0)     # + b1, ReLU
            # Layer 2 partial: scale by the w2 column and accumulate.
            return acc + h * wc[:, in_dim + 1:in_dim + 2]

        acc = lax.fori_loop(0, n_chunk, body, jnp.zeros((8, tile_b), jnp.float32))
        # Single cross-sublane reduce (XLU) at the end.
        v = jnp.sum(acc, axis=0, keepdims=True)

    o_ref[...] = (v + b2_ref[0]).astype(o_ref.dtype)


def pack_critic_params(w1, b1, w2):
    """One-time parameter transform (do NOT call per forward pass).

    w1: (H, in_dim), b1: (H,) or (H,1), w2: (H,) or (H,1)
    Returns wpack: (round_up(H, 8), in_dim + 2) f32 with columns [w1 | b1 | w2].
    Zero-padded rows contribute exactly 0 to the output (relu(0) * 0)."""
    H, in_dim = w1.shape
    wpack = jnp.concatenate(
        [w1.astype(jnp.float32),
         b1.reshape(H, 1).astype(jnp.float32),
         w2.reshape(H, 1).astype(jnp.float32)], axis=1)
    hp = _round_up(H, 8)
    if hp != H:
        wpack = jnp.pad(wpack, ((0, hp - H), (0, 0)))
    return wpack


def critic_forward_transposed(state_t, wpack, b2, *, tile_b=None):
    """state_t: (in_dim, B) f32 (batch-last layout, no wrapper copies needed).
    wpack: packed params from pack_critic_params.  Returns value: (B, 1) f32."""
    in_dim, B = state_t.shape
    hp, wcols = wpack.shape
    assert wcols == in_dim + 2

    if tile_b is None:
        # Biggest tile up to 4096: per-grid-step overhead (~600 cyc) dwarfs the
        # VPU work; VMEM cost is only ~(in_dim+1)*4*tile_b bytes double-buffered.
        # B > 4096 automatically yields >= 2 "parallel" steps (v7x dual-TC).
        tile_b = min(4096, _round_up(B, 128))

    grid = (pl.cdiv(B, tile_b),)   # ragged: last block masked, no pad pass

    cost = pl.CostEstimate(
        flops=2 * B * hp * (in_dim + 1),
        transcendentals=0,
        bytes_accessed=4 * (B * in_dim + B + wpack.size + 1),
    )

    out = pl.pallas_call(
        critic_kernel,
        out_shape=jax.ShapeDtypeStruct((1, B), jnp.float32),
        grid_spec=pltpu.PrefetchScalarGridSpec(
            num_scalar_prefetch=0,
            grid=grid,
            in_specs=[
                # state tile marches over the batch (lane) axis
                pl.BlockSpec((in_dim, tile_b), lambda i: (0, i)),
                # packed weights: constant block index -> resident in VMEM
                pl.BlockSpec((hp, in_dim + 2), lambda i: (0, 0)),
                # b2 scalar lives in SMEM
                pl.BlockSpec(memory_space=pltpu.MemorySpace.SMEM),
            ],
            out_specs=pl.BlockSpec((1, tile_b), lambda i: (0, i)),
        ),
        compiler_params=pltpu.CompilerParams(
            dimension_semantics=("parallel",),  # shard batch tiles across TCs
        ),
        cost_estimate=cost,
    )(state_t, wpack, b2)

    # (1, B) -> (B, 1): same flat layout, effectively a bitcast.
    return out.reshape(B, 1)


def critic_forward(state, wpack, b2, *, tile_b=None):
    """state: (B, in_dim) f32 (PyTorch layout).  One transpose (single copy,
    no pad pass); prefer critic_forward_transposed if the producer can keep
    state in (in_dim, B) layout."""
    return critic_forward_transposed(state.T, wpack, b2, tile_b=tile_b)


def init_critic_params(key, in_dim, hidden_dim=64, init_w=0.003):
    """Deterministic init mirroring PyTorch:
       layer1: default nn.Linear init  U(-1/sqrt(in_dim), 1/sqrt(in_dim))
       out:    init_layer_uniform      U(-init_w, init_w)
    Layouts: w1 (hidden, in_dim), b1 (hidden, 1), w2 (hidden, 1), b2 (1,)."""
    k1, k2, k3, k4 = jax.random.split(key, 4)
    bound1 = 1.0 / jnp.sqrt(jnp.float32(in_dim))
    w1 = jax.random.uniform(k1, (hidden_dim, in_dim), jnp.float32, -bound1, bound1)
    b1 = jax.random.uniform(k2, (hidden_dim, 1), jnp.float32, -bound1, bound1)
    w2 = jax.random.uniform(k3, (hidden_dim, 1), jnp.float32, -init_w, init_w)
    b2 = jax.random.uniform(k4, (1,), jnp.float32, -init_w, init_w)
    return w1, b1, w2, b2


def _reference(state, w1, b1, w2, b2):
    h = jnp.maximum(state @ w1.T + b1.reshape(1, -1), 0.0)
    return h @ w2.reshape(-1, 1) + b2.reshape(1, 1)


if __name__ == "__main__":
    key = jax.random.PRNGKey(0)
    k_state, k_params, k_state2 = jax.random.split(key, 3)

    in_dim = 3        # Pendulum-v1 observation dim
    hidden_dim = 64

    w1, b1, w2, b2 = init_critic_params(k_params, in_dim, hidden_dim)
    wpack = pack_critic_params(w1, b1, w2)   # one-time param transform

    # Small batch (single masked block).
    batch = 8
    state = jax.random.normal(k_state, (batch, in_dim), jnp.float32)
    value = jax.block_until_ready(critic_forward(state, wpack, b2))
    ref = _reference(state, w1, b1, w2, b2)
    assert value.shape == (batch, 1)
    assert jnp.allclose(value, ref, atol=1e-5, rtol=1e-5)

    # Ragged multi-step grid (B not a multiple of the tile, explicit tile_b).
    batch2 = 300
    state2 = jax.random.normal(k_state2, (batch2, in_dim), jnp.float32)
    value2 = jax.block_until_ready(critic_forward(state2, wpack, b2, tile_b=128))
    ref2 = _reference(state2, w1, b1, w2, b2)
    assert value2.shape == (batch2, 1)
    assert jnp.allclose(value2, ref2, atol=1e-5, rtol=1e-5)

    print("KERNEL_OK")
</pallas_src>

<mosaic_0001>
module attributes {stable_mosaic.version = 11 : i64} {
  func.func @critic_kernel(%arg0: i32, %arg1: memref<3x128xf32, #tpu.memory_space<vmem>>, %arg2: memref<64x5xf32, #tpu.memory_space<vmem>>, %arg3: memref<1xf32, #tpu.memory_space<smem>>, %arg4: memref<1x128xf32, #tpu.memory_space<vmem>>) attributes {dimension_semantics = [#tpu.dimension_semantics<parallel>], iteration_bounds = array<i64: 1>, scalar_prefetch = 0 : i64, scratch_operands = 0 : i64, tpu.core_type = #tpu.core_type<tc>, window_params = [{transform_indices = @transform_0, window_bounds = array<i64: 3, 128>}, {pipeline_mode = #tpu.pipeline_mode<synchronous>, transform_indices = @transform_1, window_bounds = array<i64: 64, 5>}, {transform_indices = @transform_2, window_bounds = array<i64: 1>}, {transform_indices = @transform_3, window_bounds = array<i64: 1, 128>}]} {
    %c0 = arith.constant 0 : index
    %c0_0 = arith.constant 0 : index
    %0 = vector.load %arg1[%c0, %c0_0] : memref<3x128xf32, #tpu.memory_space<vmem>>, vector<3x128xf32>
    %1 = vector.extract_strided_slice %0 {offsets = [0, 0], sizes = [1, 128], strides = [1, 1]} : vector<3x128xf32> to vector<1x128xf32>
    %2 = vector.extract_strided_slice %0 {offsets = [1, 0], sizes = [1, 128], strides = [1, 1]} : vector<3x128xf32> to vector<1x128xf32>
    %3 = vector.extract_strided_slice %0 {offsets = [2, 0], sizes = [1, 128], strides = [1, 1]} : vector<3x128xf32> to vector<1x128xf32>
    %cst = arith.constant 0.000000e+00 : f32
    %4 = vector.broadcast %cst : f32 to vector<8x128xf32>
    %c0_i32 = arith.constant 0 : i32
    %c8_i32 = arith.constant 8 : i32
    %5 = arith.addi %c0_i32, %c8_i32 : i32
    %c1_i32 = arith.constant 1 : i32
    %6 = scf.for %arg5 = %c0_i32 to %5 step %c1_i32 iter_args(%arg6 = %4) -> (vector<8x128xf32>)  : i32 {
      %c8_i32_6 = arith.constant 8 : i32
      %13 = arith.muli %arg5, %c8_i32_6 : i32
      %14 = tpu.assume_multiple %13, 8 : i32
      %15 = arith.index_cast %14 : i32 to index
      %c0_7 = arith.constant 0 : index
      %16 = vector.load %arg2[%15, %c0_7] : memref<64x5xf32, #tpu.memory_space<vmem>>, vector<8x5xf32>
      %17 = vector.extract_strided_slice %16 {offsets = [0, 0], sizes = [8, 1], strides = [1, 1]} : vector<8x5xf32> to vector<8x1xf32>
      %18 = vector.broadcast %17 : vector<8x1xf32> to vector<8x128xf32>
      %19 = vector.broadcast %1 : vector<1x128xf32> to vector<8x128xf32>
      %20 = arith.mulf %18, %19 : vector<8x128xf32>
      %21 = vector.extract_strided_slice %16 {offsets = [0, 1], sizes = [8, 1], strides = [1, 1]} : vector<8x5xf32> to vector<8x1xf32>
      %22 = vector.broadcast %21 : vector<8x1xf32> to vector<8x128xf32>
      %23 = vector.broadcast %2 : vector<1x128xf32> to vector<8x128xf32>
      %24 = arith.mulf %22, %23 : vector<8x128xf32>
      %25 = arith.addf %20, %24 : vector<8x128xf32>
      %26 = vector.extract_strided_slice %16 {offsets = [0, 2], sizes = [8, 1], strides = [1, 1]} : vector<8x5xf32> to vector<8x1xf32>
      %27 = vector.broadcast %26 : vector<8x1xf32> to vector<8x128xf32>
      %28 = vector.broadcast %3 : vector<1x128xf32> to vector<8x128xf32>
      %29 = arith.mulf %27, %28 : vector<8x128xf32>
      %30 = arith.addf %25, %29 : vector<8x128xf32>
      %31 = vector.extract_strided_slice %16 {offsets = [0, 3], sizes = [8, 1], strides = [1, 1]} : vector<8x5xf32> to vector<8x1xf32>
      %32 = vector.broadcast %31 : vector<8x1xf32> to vector<8x128xf32>
      %33 = arith.addf %30, %32 : vector<8x128xf32>
      %cst_8 = arith.constant 0.000000e+00 : f32
      %34 = vector.broadcast %cst_8 : f32 to vector<8x128xf32>
      %35 = arith.maximumf %33, %34 : vector<8x128xf32>
      %36 = vector.extract_strided_slice %16 {offsets = [0, 4], sizes = [8, 1], strides = [1, 1]} : vector<8x5xf32> to vector<8x1xf32>
      %37 = vector.broadcast %36 : vector<8x1xf32> to vector<8x128xf32>
      %38 = arith.mulf %35, %37 : vector<8x128xf32>
      %39 = arith.addf %arg6, %38 : vector<8x128xf32>
      scf.yield %39 : vector<8x128xf32>
    }
    %c8_i32_1 = arith.constant 8 : i32
    %cst_2 = arith.constant dense<0.000000e+00> : vector<128xf32>
    %7 = vector.multi_reduction <add>, %6, %cst_2 [0] : vector<8x128xf32> to vector<128xf32>
    %8 = vector.shape_cast %7 : vector<128xf32> to vector<1x128xf32>
    %c0_3 = arith.constant 0 : index
    %9 = memref.load %arg3[%c0_3] : memref<1xf32, #tpu.memory_space<smem>>
    %10 = vector.broadcast %9 : f32 to vector<1x128xf32>
    %11 = arith.addf %8, %10 : vector<1x128xf32>
    %c0_4 = arith.constant 0 : index
    %c0_5 = arith.constant 0 : index
    %12 = vector.load %arg4[%c0_4, %c0_5] : memref<1x128xf32, #tpu.memory_space<vmem>>, vector<1x128xf32>
    tpu.vector_store %arg4[%c0_4, %c0_5], %11 {strides = array<i32>} : memref<1x128xf32, #tpu.memory_space<vmem>>, vector<1x128xf32>,
    return
  }
  func.func @transform_0(%arg0: i32) -> (i32, i32) {
    %c0_i32 = arith.constant 0 : i32
    %c0_i32_0 = arith.constant 0 : i32
    return %c0_i32, %arg0 : i32, i32
  }
  func.func @transform_1(%arg0: i32) -> (i32, i32) {
    %c0_i32 = arith.constant 0 : i32
    %c0_i32_0 = arith.constant 0 : i32
    %c0_i32_1 = arith.constant 0 : i32
    return %c0_i32, %c0_i32_0 : i32, i32
  }
  func.func @transform_2(%arg0: i32) -> i32 {
    %c0_i32 = arith.constant 0 : i32
    %c0_i32_0 = arith.constant 0 : i32
    return %c0_i32 : i32
  }
  func.func @transform_3(%arg0: i32) -> (i32, i32) {
    %c0_i32 = arith.constant 0 : i32
    %c0_i32_0 = arith.constant 0 : i32
    return %c0_i32, %arg0 : i32, i32
  }
}

</mosaic_0001>

<bundles_post_ra>
// kernel: tpu_custom_call.1
= control target key start
LH: loop header
LB: loop body
LE: loop exit
PB: predicated region body
PF: predicated region fallthrough
CT: control target
= control target key end

     0   :  { %s217_s0 = inlined_call_operand.vmem [shape: f32[3,8], index: 0, kind: input, shape index: {}]   ;;  %s218_s1 = inlined_call_operand.vmem [shape: f32[64,5], index: 1, kind: input, shape index: {}]   ;;  %s219_s2 = inlined_call_operand.<no memory space> [shape: f32[1], index: 2, kind: input, shape index: {}]   ;;  %s220_s3 = inlined_call_operand.hbm [shape: f32[1,8], index: 3, kind: output, shape index: {}]  }
   0x1   :  { %8 = sst [smem:[#allocation2]] %s219_s2 }
   0x2   :  { %9 = vsyncpa [#allocation4], 0  ;;  %v16_v0 = vld [vmem:[%s217_s0] sm:$0x7]  ;;  %v162_v1 = vmov 0.0   ;;  %s202_s16 = smov 0  }
   0x3 LB: > { %v170_v2 = vmov 0   ;;  %v171_v3 = vmov 2   ;;  %s103_s2 = sshll.u32 %s168_s16, 3  ;;  %v172_v5 = vmov 1   ;;  %v173_v6 = vmov 3   ;;  %s22_s16 = sadd.s32 1, %s168_s16   ;;  %s168_s16 = sphi %s202_s16, %s22_s16   ;;  %v164_v1 = vphi %v162_v1, %v163_v1  }
   0x4   : > { %126 = vset.pattern.permute.xlu0 %v170_v2  ;;  %128 = vset.pattern.permute.xlu1 %v171_v3  ;;  %s25_s19 = scalar_lea.vmem %s218_s1, %s103_s2  ;;  %v174_v7 = vmov 4   ;;  %v32_v8 = vlaneseq  ;;  %p19_p0 = scmp.ge.s32.totalorder %s22_s16, 8  }
   0x5   : > { %v26_v4 = vld [vmem:[%s25_s19] sm:$0xff]  ;;  %s75_s0 = sld [smem:[#allocation2]] (%p19_p0)  ;;  %s175_s20 = smov (%p19_p0), [#allocation3]  }
   0x6   : > { %29 = vperm.xlu0 %126, %v26_v4   ;;  %48 = vperm.xlu1 %128, %v26_v4   ;;  %v33_v9 = vshrl.u32 %v32_v8, 7  ;;  %s85_s21 = sshll.u32 (%p19_p0), %s175_s20, 4  ;;  %s86_s21 = int_to_ptr.vmem [resolvable:$true] %s85_s21 }
   0x7   :  { %s132_s22 = scalar_lea.vmem (%p19_p0), %s86_s21, 16  ;;  %s136_s23 = scalar_lea.vmem (%p19_p0), %s86_s21, 32 }
   0x8   : > { %v34_v10 = vsub.s32 0, %v33_v9  ;;  %v43_v11 = vsub.s32 1, %v33_v9  ;;  %v53_v13 = vsub.s32 2, %v33_v9  ;;  %p133_p1 = scmp.ne.s32.totalorder (%p19_p0), %s86_s21, %s132_s22  ;;  %p137_p2 = scmp.lt.s32.totalorder (%p19_p0), %s86_s21, %s86_s21 }
   0x9   :  { %p138_p3 = scmp.lt.s32.totalorder (%p19_p0), %s136_s23, %s132_s22 }
   0xa   : > { %127 = vset.pattern.permute.xlu0 %v172_v5  ;;  %129 = vset.pattern.permute.xlu1 %v173_v6  ;;  %v35_v15 = vrot.slane %v16_v0, %v34_v10  ;;  %v44_v16 = vrot.slane %v16_v0, %v43_v11  ;;  %v54_v17 = vrot.slane %v16_v0, %v53_v13 }
   0xb   : > { %38 = vperm.xlu0 %127, %v26_v4   ;;  %58 = vperm.xlu1 %129, %v26_v4   ;;  %v76_v35 = vstv (%p19_p0), %s75_s0  ;;  %p139_p4 = por (%p19_p0), %p138_p3, %p137_p2 }
   0xd   :  { %p140_p5 = pnand (%p19_p0), %p139_p4, %p133_p1 }
   0xf   : > { %130 = vset.pattern.permute.xlu1 %v174_v7  ;;  %131 = vset.pattern.permute.xlu0 %v174_v7 }
  0x10   : > { %64 = vperm.xlu1 %130, %v26_v4  }
  0x81   : > { %v30_v12 = vpop.permute.xlu0 %29  ;;  %v49_v14 = vpop.permute.xlu1 %48 }
  0x82   : > { %v36_v19 = vmul.f32 %v35_v15, %v30_v12  ;;  %v55_v22 = vmul.f32 %v54_v17, %v49_v14 }
  0x86   : > { %v39_v18 = vpop.permute.xlu0 %38  ;;  %v59_v21 = vpop.permute.xlu1 %58 }
  0x87   : > { %v45_v20 = vmul.f32 %v44_v16, %v39_v18 }
  0x89   : > { %v46_v23 = vadd.f32 %v45_v20, %v36_v19 }
  0x8b   : > { %v56_v24 = vadd.f32 %v55_v22, %v46_v23  ;;  %v65_v26 = vpop.permute.xlu1 %64 }
  0x8d   : > { %v61_v25 = vadd.f32 %v59_v21, %v56_v24 }
  0x8f   : > { %v62_v27 = vmax.f32 %v61_v25, 0.0 }
  0x91   : > { %v67_v28 = vmul.f32 %v65_v26, %v62_v27  ;;  %21 = sbr.rel (!%p19_p0) target bundleno = 3 (0x3), region = 40 }
  0x93   : > { %v68_v29 = vadd.f32 %v164_v1, %v67_v28  }
  0x95   : > { %v163_v1 = vmov %v68_v29   ;;  %v69_v30 = vrot.slane (%p19_p0), %v68_v29, 4 }
  0x97   :  { %v70_v31 = vadd.f32 %v69_v30, %v68_v29 }
  0x99   :  { %v71_v32 = vrot.slane %v70_v31, 2 }
  0x9b   :  { %v72_v33 = vadd.f32 %v71_v32, %v70_v31 }
  0x9d   :  { %v73_v34 = vrot.slane %v72_v33, 1 }
  0x9f   :  { %v74_v36 = vadd.f32 %v73_v34, %v72_v33 }
  0xa1   :  { %v77_v37 = vadd.f32 %v76_v35, %v74_v36 }
  0xa3   :  { %78 = vst [vmem:[#allocation3] sm:$0x1] %v77_v37 }
  0xa4   :  { %143 = shalt.err (!%p140_p5)
}
  0xa5   :  { %88 = dma.vmem_to_hbm [thread:$0]  %s86_s21, 16, %s220_s3, [#allocation4]  }
  0xa6   :  { %160 = dma.done.wait [#allocation4], 16  }
  0xa7   :  { %161 = vsyncadd [#allocation4], 4294967280 }
  0xa8   :  { %92 = vsyncpa [#allocation4], 1 }

</bundles_post_ra>
